<compile_context>
chip_gen: v7x
topology: tpu7x:2x2x1
jax: 0.10.0
libtpu: 0.0.40
codegen_flags: <defaults>
</compile_context>

<pallas_src>
import numpy as np
import jax
import jax.numpy as jnp
from jax import lax
from jax.experimental import pallas as pl
from jax.experimental.pallas import tpu as pltpu


# ----------------------------- Pallas kernels ------------------------------ #

def _fused_graphsage_kernel(adj_ref, hfull_ref, hrow_ref, w1_ref, w2_ref, b_ref,
                            feat_ref, assign_ref):
    """Both GraphSage layers (feat_gc + pool_gc) fused, one node-row tile per step.

      c      = mean_{in-neighbours} h                 (shared by both layers)
      z      = hrow @ W1f + c @ W2f + bf              (fused linear, width Dout+K)
      feat   = relu(l2norm(z[:, :Dout]))
      assign = relu(l2norm(z[:, Dout:]))
    """
    adj = adj_ref[...].astype(jnp.float32)            # [tm, N] (stored bf16: 0/1 exact)
    hfull = hfull_ref[...]                            # [N, Din] (resident)
    hrow = hrow_ref[...]                              # [tm, Din]

    deg = jnp.sum(adj, axis=1, keepdims=True)         # in-degree per tile row
    c = jnp.dot(adj, hfull, preferred_element_type=jnp.float32)
    c = c / jnp.maximum(deg, 1.0)                     # mean over in-neighbours

    z = (jnp.dot(hrow, w1_ref[...], preferred_element_type=jnp.float32)
         + jnp.dot(c, w2_ref[...], preferred_element_type=jnp.float32)
         + b_ref[...])                                # [tm, Dout+K]

    dout = feat_ref.shape[1]

    def _l2norm_relu(zz):
        ss = jnp.sum(zz * zz, axis=1, keepdims=True)
        zz = zz * lax.rsqrt(jnp.maximum(ss, 1e-24))   # F.normalize(p=2, dim=1), EUP rsqrt
        return jnp.maximum(zz, 0.0)                   # activation = ReLU

    feat_ref[...] = _l2norm_relu(z[:, :dout])
    assign_ref[...] = _l2norm_relu(z[:, dout:])


def _diffpool_kernel(assign_ref, feat_ref, adjblk_ref, adjnew_ref, hpool_ref):
    """Per-graph pooling: softmax assignment, pooled features & pooled adjacency."""
    b = pl.program_id(0)
    a = assign_ref[...]                               # [n, K]
    k = a.shape[1]
    bk = adjnew_ref.shape[1]
    num_graphs = bk // k

    # softmax over the cluster dim
    a = a - jnp.max(a, axis=1, keepdims=True)
    e = jnp.exp(a)
    sm = e * pl.reciprocal(jnp.sum(e, axis=1, keepdims=True), approx=False)

    feat = feat_ref[...]                              # [n, Dout]
    adjb = adjblk_ref[0].astype(jnp.float32)          # [n, n] diagonal adjacency block

    # contract over the node axis (axis 0 of both) == sm.T @ X without a transpose copy
    cdims = (((0,), (0,)), ((), ()))
    hpool_ref[...] = lax.dot_general(sm, feat, cdims,
                                     preferred_element_type=jnp.float32)   # [K, Dout]
    tmp = jnp.dot(adjb, sm, preferred_element_type=jnp.float32)            # [n, K]
    blk = lax.dot_general(sm, tmp, cdims,
                          preferred_element_type=jnp.float32)              # [K, K]

    # adj_new is block-diagonal (no inter-graph edges): write the full [K, B*K]
    # row block, zeros off the diagonal.
    col_block = lax.broadcasted_iota(jnp.int32, (k, bk), 1) // k
    adjnew_ref[...] = jnp.where(col_block == b, jnp.tile(blk, (1, num_graphs)), 0.0)


# ------------------------------- wrappers ----------------------------------- #

def _vmem_limit(total_block_bytes):
    # inputs/outputs are double-buffered by the pipeline; add compiler scratch margin
    return int(min(32 * 1024 * 1024,
                   max(8 * 1024 * 1024, 2 * int(total_block_bytes) + 2 * 1024 * 1024)))


def _pick_row_tile(n_nodes, row_bytes, budget=8 * 1024 * 1024):
    # multiples of 16 keep bf16 sublane packing happy; budget keeps v7x (64 MiB) safe
    for t in (512, 256, 128, 64, 32, 16):
        if n_nodes % t == 0 and 2 * t * row_bytes <= budget:
            return t
    return n_nodes


def fused_graphsage(adj_bf16, h, w1f, w2f, bf, dout, k_assign, row_tile=None):
    """Single pallas_call computing both GraphSage heads (feat, assign)."""
    n_nodes, din = h.shape
    fwidth = dout + k_assign
    if row_tile is None:
        row_tile = _pick_row_tile(n_nodes, n_nodes * 2 + din * 4 + fwidth * 4)
    tm = row_tile
    assert n_nodes % tm == 0, "row_tile must divide the node count"
    assert tm == n_nodes or tm % 16 == 0, "row tile must be a multiple of 16 (bf16 adj)"

    blk_bytes = (tm * n_nodes * 2            # adj row tile (bf16)
                 + n_nodes * din * 4         # resident h
                 + tm * din * 4              # h row tile
                 + 2 * din * fwidth * 4      # fused weights
                 + fwidth * 4                # fused bias
                 + tm * dout * 4 + tm * k_assign * 4)   # outputs

    feat, assign = pl.pallas_call(
        _fused_graphsage_kernel,
        out_shape=(jax.ShapeDtypeStruct((n_nodes, dout), jnp.float32),
                   jax.ShapeDtypeStruct((n_nodes, k_assign), jnp.float32)),
        grid_spec=pltpu.PrefetchScalarGridSpec(
            num_scalar_prefetch=0,
            grid=(n_nodes // tm,),
            in_specs=[
                pl.BlockSpec((tm, n_nodes), lambda i: (i, 0)),    # adj rows (bf16)
                pl.BlockSpec((n_nodes, din), lambda i: (0, 0)),   # h (resident, DMA'd once)
                pl.BlockSpec((tm, din), lambda i: (i, 0)),        # h row tile (self part)
                pl.BlockSpec((din, fwidth), lambda i: (0, 0)),    # W1 = [feat_w1 | pool_w1]
                pl.BlockSpec((din, fwidth), lambda i: (0, 0)),    # W2 = [feat_w2 | pool_w2]
                pl.BlockSpec((1, fwidth), lambda i: (0, 0)),      # b  = [feat_b  | pool_b ]
            ],
            out_specs=(
                pl.BlockSpec((tm, dout), lambda i: (i, 0)),
                pl.BlockSpec((tm, k_assign), lambda i: (i, 0)),
            ),
        ),
        compiler_params=pltpu.CompilerParams(
            dimension_semantics=("parallel",),       # shards row tiles across v7x's 2 TCs
            vmem_limit_bytes=_vmem_limit(blk_bytes),
        ),
    )(adj_bf16, h, h, w1f, w2f, bf)
    return feat, assign


def diffpool_pool(assign, feat, adj_blocks, num_graphs):
    """Per-graph softmax + pooling; grid over the batch dimension."""
    n_nodes, k_assign = assign.shape
    n = n_nodes // num_graphs
    dout = feat.shape[1]
    bk = num_graphs * k_assign

    blk_bytes = (n * k_assign * 4 + n * dout * 4 + n * n * 2
                 + k_assign * bk * 4 + k_assign * dout * 4)

    adj_new, h_pool = pl.pallas_call(
        _diffpool_kernel,
        out_shape=(jax.ShapeDtypeStruct((bk, bk), jnp.float32),
                   jax.ShapeDtypeStruct((bk, dout), jnp.float32)),
        grid_spec=pltpu.PrefetchScalarGridSpec(
            num_scalar_prefetch=0,
            grid=(num_graphs,),
            in_specs=[
                pl.BlockSpec((n, k_assign), lambda b: (b, 0)),    # assign rows of graph b
                pl.BlockSpec((n, dout), lambda b: (b, 0)),        # feat rows of graph b
                pl.BlockSpec((1, n, n), lambda b: (b, 0, 0)),     # diagonal adj block (bf16)
            ],
            out_specs=(
                pl.BlockSpec((k_assign, bk), lambda b: (b, 0)),   # adj_new row block
                pl.BlockSpec((k_assign, dout), lambda b: (b, 0)), # h_pool block
            ),
        ),
        compiler_params=pltpu.CompilerParams(
            dimension_semantics=("parallel",),
            vmem_limit_bytes=_vmem_limit(blk_bytes),
        ),
    )(assign, feat, adj_blocks)
    return adj_new, h_pool


def diffpool_batched_graph_layer(adj, h, params, num_graphs, row_tile=None):
    """Full DiffPoolBatchedGraphLayer forward. Returns (adj_new, h_pool).

    Assumes a DGL-style batched graph: block-diagonal adjacency (no inter-graph
    edges) with equal node counts per graph.
    """
    n_nodes = h.shape[0]
    assert n_nodes % num_graphs == 0, "equal-sized graphs expected"
    n = n_nodes // num_graphs
    assert n % 8 == 0 or n == n_nodes, "per-graph node count must be a multiple of 8"
    # TODO(synk): ragged batches (varying batch_num_nodes) would need scalar-prefetch
    # node offsets + bounded-size blocks; not needed for this synthetic batch.

    dout = params["feat_w1"].shape[1]
    k_assign = params["pool_w1"].shape[1]

    # 0/1 adjacency is exact in bf16 -> halve its HBM/VMEM footprint.
    adj_bf16 = adj.astype(jnp.bfloat16)

    # fused-linear weights: one MXU pass emits [feat | assign_pre] of width Dout+K
    w1f = jnp.concatenate([params["feat_w1"], params["pool_w1"]], axis=1)
    w2f = jnp.concatenate([params["feat_w2"], params["pool_w2"]], axis=1)
    bf = jnp.concatenate([params["feat_b"], params["pool_b"]], axis=1)

    feat, assign = fused_graphsage(adj_bf16, h, w1f, w2f, bf, dout, k_assign, row_tile)

    # per-graph diagonal adjacency blocks (off-diagonal blocks are all-zero for a
    # DGL batched graph, so the pooling only ever touches the diagonal).
    idx = jnp.arange(num_graphs)
    adj_blocks = adj_bf16.reshape(num_graphs, n, num_graphs, n)[idx, :, idx, :]

    return diffpool_pool(assign, feat, adj_blocks, num_graphs)


# ----------------------------- pure-JAX reference --------------------------- #

def _ref_graphsage(adj, h, w1, w2, b):
    deg = jnp.sum(adj, axis=1, keepdims=True)
    c = (adj @ h) / jnp.maximum(deg, 1.0)
    z = h @ w1 + c @ w2 + b
    z = z / jnp.maximum(jnp.sqrt(jnp.sum(z * z, axis=1, keepdims=True)), 1e-12)
    return jnp.maximum(z, 0.0)


def _ref_forward(adj, h, graph_ids, params, num_graphs):
    feat = _ref_graphsage(adj, h, params["feat_w1"], params["feat_w2"], params["feat_b"])
    assign = _ref_graphsage(adj, h, params["pool_w1"], params["pool_w2"], params["pool_b"])
    sm = jax.nn.softmax(assign, axis=1)
    N, K = sm.shape
    BK = num_graphs * K
    col_block = jnp.arange(BK)[None, :] // K
    S = jnp.where(col_block == graph_ids, jnp.tile(sm, (1, num_graphs)), 0.0)
    h_pool = S.T @ feat
    adj_new = S.T @ (adj @ S)
    return adj_new, h_pool


# --------------------------------- main ------------------------------------- #

def _xavier(key, shape, gain=np.sqrt(2.0)):
    fan_in, fan_out = shape
    lim = gain * np.sqrt(6.0 / (fan_in + fan_out))
    return jax.random.uniform(key, shape, jnp.float32, -lim, lim)


if __name__ == "__main__":
    key = jax.random.PRNGKey(0)
    B = 2            # graphs in the batch
    n = 16           # nodes per graph
    N = B * n        # total nodes
    Din = 32         # input_dim
    Dout = 32        # output_feat_dim
    K = 8            # assign_dim (clusters per graph)

    k_adj, k_h, k1, k2, k3, k4 = jax.random.split(key, 6)

    # synthetic batched graph: per-graph symmetric adjacency (ring + random), block-diag
    blocks = []
    for b in range(B):
        kb = jax.random.fold_in(k_adj, b)
        rand = (jax.random.uniform(kb, (n, n)) < 0.3).astype(jnp.float32)
        ring = jnp.roll(jnp.eye(n, dtype=jnp.float32), 1, axis=1)
        a = jnp.clip(rand + rand.T + ring + ring.T, 0.0, 1.0)
        a = a * (1.0 - jnp.eye(n, dtype=jnp.float32))    # no self loops
        blocks.append(a)
    adj = jnp.zeros((N, N), jnp.float32)
    for b in range(B):
        adj = adj.at[b * n:(b + 1) * n, b * n:(b + 1) * n].set(blocks[b])

    graph_ids = jnp.repeat(jnp.arange(B, dtype=jnp.int32), n).reshape(N, 1)
    # block-diagonal pooling assumes no inter-graph edges (true for DGL batched graphs)
    same_graph = np.asarray(graph_ids) == np.asarray(graph_ids).T
    assert np.all(np.asarray(adj)[~same_graph] == 0.0), "batched adjacency must be block-diagonal"

    h = jax.random.normal(k_h, (N, Din), jnp.float32)

    params = {
        "feat_w1": _xavier(k1, (Din, Dout)),
        "feat_w2": _xavier(k2, (Din, Dout)),
        "feat_b": jnp.zeros((1, Dout), jnp.float32),
        "pool_w1": _xavier(k3, (Din, K)),
        "pool_w2": _xavier(k4, (Din, K)),
        "pool_b": jnp.zeros((1, K), jnp.float32),
    }

    # row_tile=16 -> 2 grid steps at this toy size, so the pipelined path is exercised
    adj_new, h_pool = diffpool_batched_graph_layer(adj, h, params, B, row_tile=16)
    jax.block_until_ready((adj_new, h_pool))

    ref_adj_new, ref_h_pool = _ref_forward(adj, h, graph_ids, params, B)
    np.testing.assert_allclose(np.asarray(adj_new), np.asarray(ref_adj_new), atol=1e-4, rtol=1e-4)
    np.testing.assert_allclose(np.asarray(h_pool), np.asarray(ref_h_pool), atol=1e-4, rtol=1e-4)
    assert adj_new.shape == (B * K, B * K) and h_pool.shape == (B * K, Dout)

    print("KERNEL_OK")
</pallas_src>

<mosaic_0001>
module attributes {stable_mosaic.version = 11 : i64} {
  func.func @_fused_graphsage_kernel(%arg0: i32, %arg1: memref<16x32xbf16, #tpu.memory_space<vmem>>, %arg2: memref<32x32xf32, #tpu.memory_space<vmem>>, %arg3: memref<16x32xf32, #tpu.memory_space<vmem>>, %arg4: memref<32x40xf32, #tpu.memory_space<vmem>>, %arg5: memref<32x40xf32, #tpu.memory_space<vmem>>, %arg6: memref<1x40xf32, #tpu.memory_space<vmem>>, %arg7: memref<16x32xf32, #tpu.memory_space<vmem>>, %arg8: memref<16x8xf32, #tpu.memory_space<vmem>>) attributes {dimension_semantics = [#tpu.dimension_semantics<parallel>], iteration_bounds = array<i64: 2>, scalar_prefetch = 0 : i64, scratch_operands = 0 : i64, tpu.core_type = #tpu.core_type<tc>, window_params = [{transform_indices = @transform_0, window_bounds = array<i64: 16, 32>}, {pipeline_mode = #tpu.pipeline_mode<synchronous>, transform_indices = @transform_1, window_bounds = array<i64: 32, 32>}, {transform_indices = @transform_2, window_bounds = array<i64: 16, 32>}, {pipeline_mode = #tpu.pipeline_mode<synchronous>, transform_indices = @transform_3, window_bounds = array<i64: 32, 40>}, {pipeline_mode = #tpu.pipeline_mode<synchronous>, transform_indices = @transform_4, window_bounds = array<i64: 32, 40>}, {pipeline_mode = #tpu.pipeline_mode<synchronous>, transform_indices = @transform_5, window_bounds = array<i64: 1, 40>}, {transform_indices = @transform_6, window_bounds = array<i64: 16, 32>}, {transform_indices = @transform_7, window_bounds = array<i64: 16, 8>}]} {
    %c0 = arith.constant 0 : index
    %c0_0 = arith.constant 0 : index
    %0 = vector.load %arg1[%c0, %c0_0] : memref<16x32xbf16, #tpu.memory_space<vmem>>, vector<16x32xbf16>
    %1 = arith.extf %0 : vector<16x32xbf16> to vector<16x32xf32>
    %c0_1 = arith.constant 0 : index
    %c0_2 = arith.constant 0 : index
    %2 = vector.load %arg2[%c0_1, %c0_2] : memref<32x32xf32, #tpu.memory_space<vmem>>, vector<32x32xf32>
    %c0_3 = arith.constant 0 : index
    %c0_4 = arith.constant 0 : index
    %3 = vector.load %arg3[%c0_3, %c0_4] : memref<16x32xf32, #tpu.memory_space<vmem>>, vector<16x32xf32>
    %cst = arith.constant dense<0.000000e+00> : vector<16xf32>
    %4 = vector.multi_reduction <add>, %1, %cst [1] : vector<16x32xf32> to vector<16xf32>
    %5 = vector.shape_cast %4 : vector<16xf32> to vector<16x1xf32>
    %cst_5 = arith.constant dense<0.000000e+00> : vector<16x32xf32>
    %6 = tpu.matmul %1, %2, %cst_5 {dimension_numbers = #tpu.dot_dimension_numbers<[1], [0], [0], [1], [0, 0, 1, 1], [], []>} : vector<16x32xf32>, vector<32x32xf32>, vector<16x32xf32> -> vector<16x32xf32>
    %cst_6 = arith.constant 1.000000e+00 : f32
    %7 = vector.broadcast %cst_6 : f32 to vector<16x1xf32>
    %8 = arith.maximumf %5, %7 : vector<16x1xf32>
    %9 = vector.broadcast %8 : vector<16x1xf32> to vector<16x32xf32>
    %10 = arith.divf %6, %9 : vector<16x32xf32>
    %c0_7 = arith.constant 0 : index
    %c0_8 = arith.constant 0 : index
    %11 = vector.load %arg4[%c0_7, %c0_8] : memref<32x40xf32, #tpu.memory_space<vmem>>, vector<32x40xf32>
    %cst_9 = arith.constant dense<0.000000e+00> : vector<16x40xf32>
    %12 = tpu.matmul %3, %11, %cst_9 {dimension_numbers = #tpu.dot_dimension_numbers<[1], [0], [0], [1], [0, 0, 1, 1], [], []>} : vector<16x32xf32>, vector<32x40xf32>, vector<16x40xf32> -> vector<16x40xf32>
    %c0_10 = arith.constant 0 : index
    %c0_11 = arith.constant 0 : index
    %13 = vector.load %arg5[%c0_10, %c0_11] : memref<32x40xf32, #tpu.memory_space<vmem>>, vector<32x40xf32>
    %cst_12 = arith.constant dense<0.000000e+00> : vector<16x40xf32>
    %14 = tpu.matmul %10, %13, %cst_12 {dimension_numbers = #tpu.dot_dimension_numbers<[1], [0], [0], [1], [0, 0, 1, 1], [], []>} : vector<16x32xf32>, vector<32x40xf32>, vector<16x40xf32> -> vector<16x40xf32>
    %15 = arith.addf %12, %14 : vector<16x40xf32>
    %c0_13 = arith.constant 0 : index
    %c0_14 = arith.constant 0 : index
    %16 = vector.load %arg6[%c0_13, %c0_14] : memref<1x40xf32, #tpu.memory_space<vmem>>, vector<1x40xf32>
    %17 = vector.broadcast %16 : vector<1x40xf32> to vector<16x40xf32>
    %18 = arith.addf %15, %17 : vector<16x40xf32>
    %19 = vector.extract_strided_slice %18 {offsets = [0, 0], sizes = [16, 32], strides = [1, 1]} : vector<16x40xf32> to vector<16x32xf32>
    %20 = arith.mulf %19, %19 : vector<16x32xf32>
    %cst_15 = arith.constant dense<0.000000e+00> : vector<16xf32>
    %21 = vector.multi_reduction <add>, %20, %cst_15 [1] : vector<16x32xf32> to vector<16xf32>
    %22 = vector.shape_cast %21 : vector<16xf32> to vector<16x1xf32>
    %cst_16 = arith.constant 1.000000e-24 : f32
    %23 = vector.broadcast %cst_16 : f32 to vector<16x1xf32>
    %24 = arith.maximumf %22, %23 : vector<16x1xf32>
    %25 = math.rsqrt %24 : vector<16x1xf32>
    %26 = vector.broadcast %25 : vector<16x1xf32> to vector<16x32xf32>
    %27 = arith.mulf %19, %26 : vector<16x32xf32>
    %cst_17 = arith.constant 0.000000e+00 : f32
    %28 = vector.broadcast %cst_17 : f32 to vector<16x32xf32>
    %29 = arith.maximumf %27, %28 : vector<16x32xf32>
    %c0_18 = arith.constant 0 : index
    %c0_19 = arith.constant 0 : index
    %30 = vector.load %arg7[%c0_18, %c0_19] : memref<16x32xf32, #tpu.memory_space<vmem>>, vector<16x32xf32>
    tpu.vector_store %arg7[%c0_18, %c0_19], %29 {strides = array<i32>} : memref<16x32xf32, #tpu.memory_space<vmem>>, vector<16x32xf32>,
    %31 = vector.extract_strided_slice %18 {offsets = [0, 32], sizes = [16, 8], strides = [1, 1]} : vector<16x40xf32> to vector<16x8xf32>
    %32 = arith.mulf %31, %31 : vector<16x8xf32>
    %cst_20 = arith.constant dense<0.000000e+00> : vector<16xf32>
    %33 = vector.multi_reduction <add>, %32, %cst_20 [1] : vector<16x8xf32> to vector<16xf32>
    %34 = vector.shape_cast %33 : vector<16xf32> to vector<16x1xf32>
    %cst_21 = arith.constant 1.000000e-24 : f32
    %35 = vector.broadcast %cst_21 : f32 to vector<16x1xf32>
    %36 = arith.maximumf %34, %35 : vector<16x1xf32>
    %37 = math.rsqrt %36 : vector<16x1xf32>
    %38 = vector.broadcast %37 : vector<16x1xf32> to vector<16x8xf32>
    %39 = arith.mulf %31, %38 : vector<16x8xf32>
    %cst_22 = arith.constant 0.000000e+00 : f32
    %40 = vector.broadcast %cst_22 : f32 to vector<16x8xf32>
    %41 = arith.maximumf %39, %40 : vector<16x8xf32>
    %c0_23 = arith.constant 0 : index
    %c0_24 = arith.constant 0 : index
    %42 = vector.load %arg8[%c0_23, %c0_24] : memref<16x8xf32, #tpu.memory_space<vmem>>, vector<16x8xf32>
    tpu.vector_store %arg8[%c0_23, %c0_24], %41 {strides = array<i32>} : memref<16x8xf32, #tpu.memory_space<vmem>>, vector<16x8xf32>,
    return
  }
  func.func @transform_0(%arg0: i32) -> (i32, i32) {
    %c0_i32 = arith.constant 0 : i32
    %c0_i32_0 = arith.constant 0 : i32
    return %arg0, %c0_i32 : i32, i32
  }
  func.func @transform_1(%arg0: i32) -> (i32, i32) {
    %c0_i32 = arith.constant 0 : i32
    %c0_i32_0 = arith.constant 0 : i32
    %c0_i32_1 = arith.constant 0 : i32
    return %c0_i32, %c0_i32_0 : i32, i32
  }
  func.func @transform_2(%arg0: i32) -> (i32, i32) {
    %c0_i32 = arith.constant 0 : i32
    %c0_i32_0 = arith.constant 0 : i32
    return %arg0, %c0_i32 : i32, i32
  }
  func.func @transform_3(%arg0: i32) -> (i32, i32) {
    %c0_i32 = arith.constant 0 : i32
    %c0_i32_0 = arith.constant 0 : i32
    %c0_i32_1 = arith.constant 0 : i32
    return %c0_i32, %c0_i32_0 : i32, i32
  }
  func.func @transform_4(%arg0: i32) -> (i32, i32) {
    %c0_i32 = arith.constant 0 : i32
    %c0_i32_0 = arith.constant 0 : i32
    %c0_i32_1 = arith.constant 0 : i32
    return %c0_i32, %c0_i32_0 : i32, i32
  }
  func.func @transform_5(%arg0: i32) -> (i32, i32) {
    %c0_i32 = arith.constant 0 : i32
    %c0_i32_0 = arith.constant 0 : i32
    %c0_i32_1 = arith.constant 0 : i32
    return %c0_i32, %c0_i32_0 : i32, i32
  }
  func.func @transform_6(%arg0: i32) -> (i32, i32) {
    %c0_i32 = arith.constant 0 : i32
    %c0_i32_0 = arith.constant 0 : i32
    return %arg0, %c0_i32 : i32, i32
  }
  func.func @transform_7(%arg0: i32) -> (i32, i32) {
    %c0_i32 = arith.constant 0 : i32
    %c0_i32_0 = arith.constant 0 : i32
    return %arg0, %c0_i32 : i32, i32
  }
}

</mosaic_0001>

<bundles_post_ra>
// kernel: tpu_custom_call.1
= control target key start
LH: loop header
LB: loop body
LE: loop exit
PB: predicated region body
PF: predicated region fallthrough
CT: control target
= control target key end

     0   :  { %s1742_s0 = inlined_call_operand.hbm [shape: bf16[32,32], index: 0, kind: input, shape index: {}]   ;;  %s1743_s1 = inlined_call_operand.hbm [shape: f32[32,32], index: 1, kind: input, shape index: {}]   ;;  %s1744_s2 = inlined_call_operand.hbm [shape: f32[32,32], index: 2, kind: input, shape index: {}]   ;;  %s1745_s3 = inlined_call_operand.hbm [shape: f32[32,40], index: 3, kind: input, shape index: {}]   ;;  %s1746_s4 = inlined_call_operand.hbm [shape: f32[32,40], index: 4, kind: input, shape index: {}]   ;;  %s1747_s5 = inlined_call_operand.vmem [shape: f32[1,40], index: 5, kind: input, shape index: {}]   ;;  %s1748_s6 = inlined_call_operand.hbm [shape: f32[32,32], index: 6, kind: output, shape index: {0}]   ;;  %s1749_s7 = inlined_call_operand.vmem [shape: f32[32,8], index: 7, kind: output, shape index: {1}]  }
   0x1   :  { %1769 = sst [smem:[#allocation23_spill]] %s1742_s0 }
   0x2   :  { %1770 = sst [smem:[#allocation24_spill]] %s1743_s1 }
   0x3   :  { %1771 = sst [smem:[#allocation25_spill]] %s1748_s6 }
   0x4   :  { %1772 = sst [smem:[#allocation26_spill]] %s1749_s7 }
   0x5   :  { %13 = vsyncpa [#allocation3], 0 }
   0x6   :  { %15 = vsyncpa [#allocation3 + $0x1], 0 }
   0x7   :  { %16 = vsyncpa [#allocation6], 0 }
   0x8   :  { %17 = vsyncpa [#allocation10], 0 }
   0x9   :  { %18 = vsyncpa [#allocation4], 0 }
   0xa   :  { %20 = vsyncpa [#allocation4 + $0x1], 0  ;;  %s1398_s24 = smov 0   ;;  %s1400_s25 = smov 0  }
   0xb   :  { %s1402_s26 = smov 0   ;;  %s1404_s27 = smov 0  }
   0xc LB: > { %1773 = sst [smem:[#allocation18_spill]] %s1331_s24  ;;  %s1419_s28 = sadd.s32 4294967295, %s1343_s27   ;;  %s1343_s27 = sphi %s1404_s27, %s1810_s27   ;;  %s1339_s26 = sphi %s1402_s26, %s1812_s26   ;;  %s1335_s25 = sphi %s1400_s25, %s1814_s25   ;;  %s1331_s24 = sphi %s1398_s24, %s1813_s24  }
   0xd   : > { %1774 = sst [smem:[#allocation19_spill]] %s1339_s26  ;;  %s899_s29 = sadd.s32 4294967294, %s1343_s27  }
   0xe   : > { %p46_p0 = scmp.ne.s32.totalorder %s1335_s25, %s1331_s24  ;;  %p1750_p1 = scmp.eq.s32.totalorder %s1419_s28, 0 }
   0xf   : > { %p186_p3 = scmp.eq.s32.totalorder %s899_s29, 1  ;;  %p900_p5 = scmp.ge.s32.totalorder %s1343_s27, 1 }
  0x10   : > { %p1428_p4 = por %p1750_p1, %p46_p0  ;;  %p219_p7 = scmp.lt.s32.totalorder %s1343_s27, 3 }
  0x11   : > { %p1433_p6 = por %p186_p3, %p46_p0  ;;  %s1345_s10 = smov [#allocation5]  }
  0x12   : > { %s1775_s30 = scalar_select %p1428_p4, 1, 0 }
  0x13   : > { %s1776_s8 = scalar_select %p1433_p6, 1, 0 }
  0x14   : > { %p1438_p8 = pnand %p900_p5, %p219_p7  ;;  %s231_s11 = sshll.u32 %s1345_s10, 4  ;;  %s1442_s11 = int_to_ptr.vmem [resolvable:$true] %s231_s11 }
  0x15   : > { %1777 = sst [smem:[#allocation20_spill]] %s1776_s8  ;;  %s1454_s13 = sadd.s32 1, %s1343_s27  }
  0x16   : > { %s1778_s9 = scalar_select %p1438_p8, 1, 0 }
  0x17   : > { %p1034_p9 = pneg %p1438_p8  ;;  %1780 = sst [smem:[#allocation21_spill]] %s1454_s13 }
  0x18   : > { %s33_s14 = sadd.s32 1, %s1339_s26  ;;  %s30_s15 = ssub.s32 %s1343_s27, %s1454_s13 }
  0x19   : > { %p1449_p11 = pnand %p1034_p9, %p1750_p1  ;;  %s1781_s1 = sld [smem:[#allocation24_spill]] }
  0x1b   : > { %s1779_s12 = scalar_select %p1449_p11, 1, 0 }
  0x1c   : > { %p1467_p13 = pneg %p1449_p11 }
  0x1f   : > { %s1117_s18 = scalar_lea.hbm %s1781_s1, 512 }
  0x20   : > { %p1118_p12 = scmp.ne.s32.totalorder %s1781_s1, %s1117_s18  ;;  %p1124_p5 = scmp.lt.u32.totalorder %s1117_s18, %s1781_s1 }
  0x22   : > { %p1120_p0 = pnand %p1467_p13, %p1118_p12 }
  0x24   : > { %p1121_p3 = pneg %p1120_p0 }
  0x26   : > { %p1126_p7 = pnand %p1124_p5, %p1121_p3 }
  0x28   : > { %1129 = shalt.err (!%p1126_p7)
}
  0x29   : > { %s1130_s29 = scalar_lea.vmem %s1442_s11, 512  ;;  %p1138_p2 = scmp.lt.s32.totalorder %s1442_s11, %s1442_s11 }
  0x2a   : > { %p1131_p9 = scmp.ne.s32.totalorder %s1442_s11, %s1130_s29  ;;  %p1139_p6 = scmp.lt.s32.totalorder %s1130_s29, %s1130_s29 }
  0x2c   : > { %p1133_p10 = pnand %p1131_p9, %p1467_p13  ;;  %p1140_p12 = por %p1139_p6, %p1138_p2 }
  0x2e   : > { %p1134_p1 = pneg %p1133_p10 }
  0x30   : > { %p1141_p0 = pnand %p1140_p12, %p1134_p1 }
  0x32   : > { %1144 = shalt.err (!%p1141_p0)
}
  0x33   : > { %s1755_s10 = smov 128   ;;  %s1757_s16 = smov 8  }
  0x34   : > { %1037 = dma.hbm_to_vmem [thread:$0]  (!%p1449_p11), %s1781_s1, 512, %s1442_s11, [#allocation6], %s1755_s10, %s1755_s10, %s1757_s16  }
  0x35   : > { %p31_p1 = scmp.eq.s32.totalorder %s30_s15, 0  ;;  %p40_p2 = scmp.ne.s32.totalorder %s1339_s26, %s1335_s25 }
  0x36   : > { %p41_p6 = scmp.eq.s32.totalorder %s1343_s27, 0  ;;  %p1058_p10 = scmp.lt.s32.totalorder %s1343_s27, 2 }
  0x37   : > { %s1496_s19 = scalar_select %p31_p1, %s1339_s26, %s33_s14  }
  0x38   : > { %p42_p3 = por %p41_p6, %p40_p2  ;;  %p1784_p5 = scmp.eq.s32.totalorder %s1419_s28, 1 }
  0x39   : > { %1783 = sst [smem:[#allocation22_spill]] %s1496_s19  ;;  %s274_s22 = sand.u32 1, %s1343_s27  }
  0x3a   : > { %p1500_p7 = por %p1784_p5, %p40_p2  ;;  %s276_s23 = sand.u32 1, %s1339_s26  }
  0x3b   : > { %s905_s29 = sshll.u32 %s276_s23, 3  ;;  %s932_s13 = sshll.u32 %s1343_s27, 7 }
  0x3c   : > { %s1785_s20 = scalar_select %p1500_p7, 1, 0 }
  0x3d   : > { %s1786_s0 = sld [smem:[#allocation23_spill]]  ;;  %s278_s14 = scalar_lea.vmem [#allocation2], %s905_s29 }
  0x3e   : > { %s285_s15 = sshll.u32 %s278_s14, 4  ;;  %p1514_p9 = pnand %p1058_p10, %p42_p3  ;;  %s1512_s15 = int_to_ptr.vmem [resolvable:$true] %s285_s15 }
  0x3f   : > { %s1518_s18 = sshll.u32 %s276_s23, 4  ;;  %s1520_s10 = scalar_lea.sflag [#allocation3], %s274_s22 }
  0x40   : > { %s1787_s17 = scalar_select %p1514_p9, 1, 0 }
  0x41   : > { %p1765_p0 = pneg %p1514_p9 }
  0x43   : > { %s1510_s11 = scalar_lea.hbm %s1786_s0, %s932_s13  ;;  %s1150_s29 = scalar_lea.hbm %s1786_s0, 256 }
  0x44   : > { %s1145_s24 = scalar_lea.hbm %s1510_s11, 128  ;;  %p1151_p6 = scmp.lt.u32.totalorder %s1510_s11, %s1786_s0 }
  0x45   : > { %p1146_p12 = scmp.ne.s32.totalorder %s1510_s11, %s1145_s24  ;;  %p1152_p10 = scmp.lt.u32.totalorder %s1150_s29, %s1145_s24 }
  0x46   : > { %p1154_p5 = scmp.lt.u32.totalorder %s1145_s24, %s1510_s11 }
  0x47   : > { %p1148_p1 = pnand %p1765_p0, %p1146_p12  ;;  %p1153_p3 = por %p1152_p10, %p1151_p6 }
  0x49   : > { %p1149_p2 = pneg %p1148_p1  ;;  %p1155_p7 = por %p1154_p5, %p1153_p3 }
  0x4b   : > { %p1156_p4 = pnand %p1155_p7, %p1149_p2 }
  0x4d   : > { %1159 = shalt.err (!%p1156_p4)
}
  0x4e   : > { %s1160_s22 = scalar_lea.vmem %s1512_s15, 128  ;;  %s1348_s23 = smov [#allocation2]  }
  0x4f   : > { %p1161_p12 = scmp.ne.s32.totalorder %s1512_s15, %s1160_s22  ;;  %s1165_s8 = sshll.u32 %s1348_s23, 4  ;;  %s1166_s8 = int_to_ptr.vmem [resolvable:$false] %s1165_s8 }
  0x50   : > { %s1167_s16 = scalar_lea.vmem %s1166_s8, 256  ;;  %p1168_p11 = scmp.lt.s32.totalorder %s1512_s15, %s1166_s8 }
  0x51   : > { %p1163_p1 = pnand %p1161_p12, %p1765_p0  ;;  %p1169_p6 = scmp.lt.s32.totalorder %s1167_s16, %s1160_s22 }
  0x53   : > { %p1164_p8 = pneg %p1163_p1  ;;  %p1170_p10 = por %p1169_p6, %p1168_p11 }
  0x55   : > { %p1171_p3 = pnand %p1170_p10, %p1164_p8 }
  0x57   : > { %1174 = shalt.err (!%p1171_p3)
}
  0x58   : > { %s1349_s24 = smov 64   ;;  %s1350_s13 = smov 4  }
  0x59   : > { %1047 = dma.hbm_to_vmem [thread:$0]  (!%p1514_p9), %s1510_s11, 128, %s1512_s15, %s1520_s10, %s1349_s24, %s1349_s24, %s1350_s13  }
  0x5a   : > { %s299_s29 = scalar_lea.vmem [#allocation7], %s1518_s18  ;;  %s1351_s23 = smov [#allocation8]  }
  0x5b   : > { %s1549_s14 = sshll.u32 %s299_s29, 4  ;;  %s244_s0 = sshll.u32 %s1351_s23, 4  ;;  %s245_s0 = int_to_ptr.vmem [resolvable:$true] %s244_s0  ;;  %s1600_s14 = int_to_ptr.vmem [resolvable:$true] %s1549_s14 }
  0x5c   : > { %s1175_s16 = scalar_lea.hbm %s1745_s3, 512 }
  0x5d   : > { %p1176_p4 = scmp.ne.s32.totalorder %s1745_s3, %s1175_s16  ;;  %p1182_p7 = scmp.lt.u32.totalorder %s1175_s16, %s1745_s3 }
  0x5f   : > { %p1178_p8 = pnand %p1176_p4, %p1467_p13 }
  0x61   : > { %p1179_p11 = pneg %p1178_p8 }
  0x63   : > { %p1184_p2 = pnand %p1182_p7, %p1179_p11 }
  0x65   : > { %1187 = shalt.err (!%p1184_p2)
}
  0x66   : > { %s1188_s11 = scalar_lea.vmem %s245_s0, 512  ;;  %p1196_p6 = scmp.lt.s32.totalorder %s245_s0, %s245_s0 }
  0x67   : > { %p1189_p5 = scmp.ne.s32.totalorder %s245_s0, %s1188_s11  ;;  %p1197_p10 = scmp.lt.s32.totalorder %s1188_s11, %s1188_s11 }
  0x69   : > { %p1191_p12 = pnand %p1189_p5, %p1467_p13  ;;  %p1198_p3 = por %p1197_p10, %p1196_p6 }
  0x6b   : > { %p1192_p1 = pneg %p1191_p12 }
  0x6d   : > { %p1199_p0 = pnand %p1198_p3, %p1192_p1 }
  0x6f   : > { %1202 = shalt.err (!%p1199_p0)
}
  0x70   : > { %p1788_p4 = scmp.ne.s32.totalorder %s1779_s12, 0  ;;  %s1789_s1 = smov 8  }
  0x71   : > { %s1790_s19 = smov 128   ;;  %s1352_s15 = smov [#allocation9]  }
  0x72   : > { %1040 = dma.hbm_to_vmem [thread:$0]  (!%p1788_p4), %s1745_s3, 512, %s245_s0, [#allocation6], %s1790_s19, %s1790_s19, %s1789_s1  }
  0x73   : > { %s257_s18 = sshll.u32 %s1352_s15, 4  ;;  %s933_s24 = sshll.u32 %s1343_s27, 8  ;;  %s258_s18 = int_to_ptr.vmem [resolvable:$true] %s257_s18 }
  0x74   : > { %s1576_s23 = scalar_lea.hbm %s1744_s2, %s933_s24  ;;  %s1203_s16 = scalar_lea.hbm %s1746_s4, 512 }
  0x75   : > { %p1204_p0 = scmp.ne.s32.totalorder %s1746_s4, %s1203_s16  ;;  %p1210_p7 = scmp.lt.u32.totalorder %s1203_s16, %s1746_s4 }
  0x77   : > { %p1206_p8 = pnand %p1204_p0, %p1467_p13 }
  0x79   : > { %p1207_p11 = pneg %p1206_p8 }
  0x7b   : > { %p1212_p2 = pnand %p1210_p7, %p1207_p11 }
  0x7d   : > { %1215 = shalt.err (!%p1212_p2)
}
  0x7e   : > { %s1216_s26 = scalar_lea.vmem %s258_s18, 512  ;;  %p1224_p6 = scmp.lt.s32.totalorder %s258_s18, %s258_s18 }
  0x7f   : > { %p1217_p5 = scmp.ne.s32.totalorder %s258_s18, %s1216_s26  ;;  %p1225_p10 = scmp.lt.s32.totalorder %s1216_s26, %s1216_s26 }
  0x81   : > { %p1219_p12 = pnand %p1217_p5, %p1467_p13  ;;  %p1226_p3 = por %p1225_p10, %p1224_p6 }
  0x83   : > { %p1220_p1 = pneg %p1219_p12 }
  0x85   : > { %p1227_p9 = pnand %p1226_p3, %p1220_p1 }
  0x87   : > { %1230 = shalt.err (!%p1227_p9)
}
  0x88   : > { %1043 = dma.hbm_to_vmem [thread:$0]  (!%p1788_p4), %s1746_s4, 512, %s258_s18, [#allocation10], %s1790_s19, %s1790_s19, %s1789_s1  }
  0x89   : > { %s1231_s21 = scalar_lea.hbm %s1576_s23, 256  ;;  %p1791_p9 = scmp.ne.s32.totalorder %s1787_s17, 0 }
  0x8a   : > { %p1232_p13 = scmp.ne.s32.totalorder %s1576_s23, %s1231_s21  ;;  %s1236_s13 = scalar_lea.hbm %s1744_s2, 512 }
  0x8b   : > { %p1792_p0 = pneg %p1791_p9  ;;  %p1237_p7 = scmp.lt.u32.totalorder %s1576_s23, %s1744_s2 }
  0x8c   : > { %p1238_p2 = scmp.lt.u32.totalorder %s1236_s13, %s1231_s21  ;;  %p1240_p12 = scmp.lt.u32.totalorder %s1231_s21, %s1576_s23 }
  0x8d   : > { %p1234_p8 = pnand %p1232_p13, %p1792_p0 }
  0x8e   : > { %p1239_p5 = por %p1238_p2, %p1237_p7 }
  0x8f   : > { %p1235_p11 = pneg %p1234_p8 }
  0x90   : > { %p1241_p4 = por %p1240_p12, %p1239_p5 }
  0x92   : > { %p1242_p1 = pnand %p1241_p4, %p1235_p11 }
  0x94   : > { %1245 = shalt.err (!%p1242_p1)
}
  0x95   : > { %s1246_s18 = scalar_lea.vmem %s1600_s14, 256  ;;  %p1793_p10 = pmov %p1792_p0 }
  0x96   : > { %p1247_p6 = scmp.ne.s32.totalorder %s1600_s14, %s1246_s18  ;;  %s1353_s8 = smov [#allocation7]  }
  0x97   : > { %s1251_s16 = sshll.u32 %s1353_s8, 4  ;;  %s1252_s16 = int_to_ptr.vmem [resolvable:$false] %s1251_s16 }
  0x98   : > { %p1249_p3 = pnand %p1247_p6, %p1793_p10  ;;  %s1253_s11 = scalar_lea.vmem %s1252_s16, 512 }
  0x99   : > { %p1254_p0 = scmp.lt.s32.totalorder %s1600_s14, %s1252_s16  ;;  %p1255_p8 = scmp.lt.s32.totalorder %s1253_s11, %s1246_s18 }
  0x9a   : > { %p1250_p13 = pneg %p1249_p3 }
  0x9b   : > { %p1256_p7 = por %p1255_p8, %p1254_p0 }
  0x9d   : > { %p1257_p2 = pnand %p1256_p7, %p1250_p13 }
  0x9f   : > { %1260 = shalt.err (!%p1257_p2)
}
  0xa0   : > { %1050 = dma.hbm_to_vmem [thread:$0]  (!%p1791_p9), %s1576_s23, 256, %s1600_s14, %s1520_s10, %s1790_s19, %s1790_s19, %s1789_s1  }
  0xa1   : > { %p1794_p11 = scmp.ne.s32.totalorder %s1778_s9, 0 }
  0xa2   : > { %s320_s0 = sand.u32 (!%p1794_p11), 1, %s1419_s28   ;;  %s1633_s7 = sand.u32 (!%p1794_p11), 1, %s1335_s25  }
  0xa3   : > { %318 = sbr.rel (%p1794_p11) target bundleno = 1031 (0x407), region = 44  ;;  %s912_s26 = sshll.u32 (!%p1794_p11), %s1633_s7, 3 }
  0xa4   : > { %s321_s6 = scalar_lea.sflag (!%p1794_p11), [#allocation3], %s320_s0  ;;  %s324_s17 = scalar_lea.vmem (!%p1794_p11), [#allocation2], %s912_s26 }
  0xa5   : > { %p1795_p5 = scmp.ne.s32.totalorder (!%p1794_p11), %s1775_s30, 0 }
  0xaa   : > { %1306 = dma.done.wait (%p1795_p5), %s321_s6, 128  }
  0xab   : > { %1308 = vsyncadd (%p1795_p5), %s321_s6, 4294967168  ;;  %p1796_p9 = scmp.eq.s32.totalorder %s1419_s28, 0 }
  0xad   : > { %1310 = dma.done.wait (%p1796_p9), [#allocation6], 512   ;;  %p1797_p12 = pmov %p1796_p9 }
  0xae   : > { %s914_s9 = sshll.u32 %s1633_s7, 4 }
  0xaf   : > { %1312 = vsyncadd (%p1797_p12), [#allocation6], 4294966784  ;;  %s1647_s10 = scalar_lea.vmem [#allocation7], %s914_s9 }
  0xb0   : > { %1314 = dma.done.wait (%p1795_p5), %s321_s6, 256  }
  0xb1   : > { %1316 = vsyncadd (%p1795_p5), %s321_s6, 4294967040  ;;  %p1798_p4 = pmov %p1796_p9 }
  0xb3   : > { %1318 = dma.done.wait (%p1798_p4), [#allocation6], 512   ;;  %p1799_p1 = pmov %p1798_p4 }
  0xb5   : > { %1320 = vsyncadd (%p1799_p1), [#allocation6], 4294966784  ;;  %p1800_p6 = pmov %p1799_p1 }
  0xb6   : > { %p1801_p10 = pmov %p1799_p1 }
  0xb7   : > { %1322 = dma.done.wait (%p1800_p6), [#allocation10], 512  }
  0xb8   : > { %1324 = vsyncadd (%p1801_p10), [#allocation10], 4294966784  ;;  %v399_v0 = vld [vmem:[#allocation5] sm:$0xff]  ;;  %v400_v1 = vld [vmem:[#allocation5 + $0x8] sm:$0xff]  ;;  %vm405_vm0 = vcmask 261120   ;;  %s1354_s1 = smov 96  }
  0xb9   : > { %v401_v2 = vld [vmem:[#allocation5 + $0x10] sm:$0xff]  ;;  %v990_v3 = vpack.c.bf16 %v400_v1, %v399_v0  ;;  %v402_v4 = vld [vmem:[#allocation5 + $0x18] sm:$0xff]  ;;  %v503_v11 = vld [vmem:[#allocation9] sm:$0xff]  ;;  %vm704_vm1 = vcmask 64512   ;;  %s934_s19 = sshll.u32 %s1419_s28, 8  ;;  %s378_s23 = scalar_lea.vmem [#allocation11], %s914_s9 }
  0xba   : > { %v936_v5 = vld [vmem:[%s324_s17] sm:$0xff]   ;;  %v994_v6 = vpack.c.bf16 %v402_v4, %v401_v2  ;;  %v504_v12 = vld [vmem:[#allocation9 + $0x8] sm:$0xff]  ;;  %v499_v17 = vld [vmem:[#allocation8] sm:$0xff]  ;;  %s748_s15 = sshll.u32 %s378_s23, 4  ;;  %s1802_s24 = sld [smem:[#allocation25_spill]]  ;;  %s1691_s15 = int_to_ptr.vmem [resolvable:$true] %s748_s15 }
  0xbb   : > { %v937_v7 = vunpack.c.l.bf16 %v936_v5  ;;  %991 = vmatprep.subr.bf16.mxu0 %v990_v3  ;;  %v938_v8 = vunpack.c.h.bf16 %v936_v5  ;;  %v998_v13 = vpack.c.bf16 %v504_v12, %v503_v11  ;;  %v505_v14 = vld [vmem:[#allocation9 + $0x10] sm:$0xff]  ;;  %v506_v15 = vld [vmem:[#allocation9 + $0x18] sm:$0xff]  ;;  %v500_v18 = vld [vmem:[#allocation8 + $0x8] sm:$0xff]  ;;  %s730_s22 = scalar_lea.sflag [#allocation4], %s1633_s7  ;;  %s1261_s18 = scalar_lea.vmem %s1691_s15, 256 }
  0xbc   : > { %993 = vmatpush3.bf16.msra.mxu0 %v990_v3  ;;  %v1002_v16 = vpack.c.bf16 %v506_v15, %v505_v14  ;;  %v1006_v19 = vpack.c.bf16 %v500_v18, %v499_v17  ;;  %v501_v26 = vld [vmem:[#allocation8 + $0x10] sm:$0xff]  ;;  %v502_v27 = vld [vmem:[#allocation8 + $0x18] sm:$0xff]  ;;  %p1262_p3 = scmp.ne.s32.totalorder %s1691_s15, %s1261_s18  ;;  %p1804_p13 = scmp.ne.s32.totalorder %s1785_s20, 0 }
  0xbd   : > { %965 = vmatprep.mubr.msk.f32.mxu0 %vm405_vm0, %v937_v7  ;;  %v406_v9 = vsel %vm405_vm0, %v937_v7, 0.0  ;;  %995 = vmatprep.subr.bf16.mxu0 %v994_v6  ;;  %v409_v10 = vsel %vm405_vm0, %v938_v8, 0.0  ;;  %v1010_v32 = vpack.c.bf16 %v502_v27, %v501_v26  ;;  %v403_v33 = vld [vmem:[%s1647_s10] sm:$0xff]  ;;  %v404_v34 = vld [vmem:[%s1647_s10 + $0x8] sm:$0xff]  ;;  %s1355_s8 = smov [#allocation11]  }
  0xbe   : > { %407 = vadd.xlane.f32.xlu0 %v406_v9  ;;  %999 = vmatprep.subr.bf16.mxu1 %v998_v13  ;;  %v926_v35 = vld [vmem:[%s1747_s5] ss:$0 sm:$0xff]  ;;  %p1263_p0 = pnand %p1262_p3, %p1804_p13  ;;  %s1265_s16 = sshll.u32 %s1355_s8, 4  ;;  %s1266_s16 = int_to_ptr.vmem [resolvable:$false] %s1265_s16 }
  0xbf   : > { %1001 = vmatpush3.bf16.msra.mxu1 %v998_v13  ;;  %s1267_s11 = scalar_lea.vmem %s1266_s16, 512  ;;  %p1268_p7 = scmp.lt.s32.totalorder %s1691_s15, %s1266_s16 }
  0xc0   : > { %997 = vmatpush3.bf16.msra.mxu0 %v994_v6  ;;  %1003 = vmatprep.subr.bf16.mxu1 %v1002_v16  ;;  %s1803_s13 = smov %s1802_s24  ;;  %s1689_s29 = scalar_lea.hbm %s1802_s24, %s934_s19 }
  0xc1   : > { %p1264_p8 = pneg %p1263_p0  ;;  %p1269_p2 = scmp.lt.s32.totalorder %s1267_s11, %s1261_s18 }
  0xc2   : > { %410 = vadd.xlane.f32.xlu0 %v409_v10 }
  0xc3   : > { %966 = vmatmul.mubr.msk.f32.vlgmr.msra.gmra.mrb[0].mxu0 %vm405_vm0, %v938_v8  ;;  %1005 = vmatpush3.bf16.msra.mxu1 %v1002_v16  ;;  %p1270_p11 = por %p1269_p2, %p1268_p7 }
  0xc4   : > { %1007 = vmatprep.subr.bf16.mxu1 %v1006_v19 }
  0xc5   : > { %p1271_p5 = pnand %p1270_p11, %p1264_p8 }
 0x14b   : > { %v408_v20 = vpop.xlane.xlu0 %407 }
 0x14c   : > { %v493_v23 = vmax.f32 %v408_v20, 1.0 }
 0x14f   : > { %v411_v21 = vpop.xlane.xlu0 %410 }
 0x150   : > { %v494_v22 = vmax.f32 %v411_v21, 1.0 }
 0x152   : > { %1105 = vrcp.f32 %v494_v22 }
 0x153   : > { %1107 = vrcp.f32 %v493_v23 }
 0x15c   : > { %v1106_v24 = vpop.eup %1105 }
 0x15d   : > { %v1108_v28 = vpop.eup %1107 }
 0x196   : > { %v967_v25 = vpop.f32.mrb[0].mxu0 }
 0x197   : > { %v484_v29 = vpop.f32.mrb[1].mxu0  ;;  %v498_v31 = vmul.f32 %v1106_v24, %v967_v25 }
 0x198   : > { %v496_v30 = vmul.f32 %v1108_v28, %v484_v29 }
 0x19a   : > { %976 = vmatprep.mubr.msk.f32.mxu1 %vm405_vm0, %v496_v30 }
 0x19b   : > { %977 = vmatmul.mubr.msk.f32.vlgmr.msra.gmra.mrb[0].mxu1 %vm405_vm0, %v498_v31 }
 0x19c   : > { %1009 = vmatpush3.bf16.msra.mxu1 %v1006_v19  ;;  %987 = vmatprep.mubr.msk.f32.mxu1 %vm405_vm0, %v403_v33 }
 0x19d   : > { %1011 = vmatprep.subr.bf16.mxu1 %v1010_v32 }
 0x1a0   : > { %1013 = vmatpush3.bf16.msra.mxu1 %v1010_v32 }
 0x1a3   : > { %988 = vmatmul.mubr.msk.f32.vlgmr.msra.gmra.mrb[0].mxu1 %vm405_vm0, %v404_v34 }
 0x276   : > { %v989_v36 = vpop.f32.mrb[0].mxu1 }
 0x277   : > { %v660_v37 = vpop.f32.mrb[1].mxu1  ;;  %v677_v39 = vadd.f32 %v989_v36, %v926_v35 }
 0x278   : > { %v676_v38 = vadd.f32 %v926_v35, %v660_v37 }
 0x279   : > { %v679_v41 = vmul.f32 %v677_v39, %v677_v39 }
 0x27a   : > { %v678_v40 = vmul.f32 %v676_v38, %v676_v38 }
 0x27b   : > { %v683_v47 = vsel %vm405_vm0, %v679_v41, 0.0 }
 0x27c   : > { %698 = vrot.lane.b32.xlu1 %v678_v40, %s1354_s1  ;;  %v680_v46 = vsel %vm405_vm0, %v678_v40, 0.0 }
 0x280   : > { %700 = vrot.lane.b32.xlu1 %v679_v41, %s1354_s1 }
 0x2ee   : > { %v699_v42 = vpop.permute.xlu1 %698 }
 0x2ef   : > { %v705_v43 = vsel %vm704_vm1, %v699_v42, 0.0 }
 0x2f0   : > { %706 = vadd.xlane.f32.xlu0 %v705_v43 }
 0x2f2   : > { %v701_v44 = vpop.permute.xlu1 %700 }
 0x2f3   : > { %v708_v45 = vsel %vm704_vm1, %v701_v44, 0.0 }
 0x2f4   : > { %709 = vadd.xlane.f32.xlu1 %v708_v45  ;;  %681 = vadd.xlane.f32.xlu0 %v680_v46 }
 0x2f8   : > { %684 = vadd.xlane.f32.xlu0 %v683_v47 }
 0x37d   : > { %v707_v48 = vpop.xlane.xlu0 %706 }
 0x37e   : > { %v711_v49 = vmax.f32 %v707_v48, 1e-24 }
 0x380   : > { %1109 = vrsqrt.f32 %v711_v49 }
 0x381   : > { %v710_v50 = vpop.xlane.xlu1 %709  ;;  %v682_v51 = vpop.xlane.xlu0 %681 }
 0x382   : > { %v712_v52 = vmax.f32 %v710_v50, 1e-24  ;;  %v686_v53 = vmax.f32 %v682_v51, 1e-24 }
 0x384   : > { %1111 = vrsqrt.f32 %v712_v52 }
 0x385   : > { %1113 = vrsqrt.f32 %v686_v53  ;;  %v685_v54 = vpop.xlane.xlu0 %684 }
 0x386   : > { %v687_v55 = vmax.f32 %v685_v54, 1e-24 }
 0x388   : > { %1115 = vrsqrt.f32 %v687_v55 }
 0x38a   : > { %v1110_v56 = vpop.eup %1109 }
 0x38b   : > { %v715_v57 = vmul.f32 %v1110_v56, %v676_v38 }
 0x38d   : > { %v717_v58 = vmax.f32 %v715_v57, 0.0 }
 0x38e   : > { %v1112_v59 = vpop.eup %1111 }
 0x38f   : > { %v1114_v60 = vpop.eup %1113  ;;  %721 = vrot.lane.b32.xlu0 %v717_v58, %s1354_s1  ;;  %v716_v61 = vmul.f32 %v1112_v59, %v677_v39 }
 0x390   : > { %v690_v62 = vmul.f32 %v1114_v60, %v676_v38 }
 0x391   : > { %v718_v63 = vmax.f32 %v716_v61, 0.0 }
 0x392   : > { %v1116_v0 = vpop.eup %1115  ;;  %v692_v1 = vmax.f32 %v690_v62, 0.0 }
 0x393   : > { %v691_v2 = vmul.f32 %v1116_v0, %v677_v39  ;;  %723 = vrot.lane.b32.xlu0 %v718_v63, %s1354_s1 }
 0x394   : > { %694 = vst.msk [vmem:[%s378_s23] sm:$0xff] %vm405_vm0, %v692_v1 }
 0x395   : > { %v693_v3 = vmax.f32 %v691_v2, 0.0 }
 0x397   : > { %695 = vst.msk [vmem:[%s378_s23 + $0x8] sm:$0xff] %vm405_vm0, %v693_v3 }
 0x398   : > { %1274 = shalt.err (!%p1271_p5)
}
 0x399   : > { %s1275_s0 = scalar_lea.hbm %s1689_s29, 256  ;;  %s1279_s17 = scalar_lea.hbm %s1803_s13, 512 }
 0x39a   : > { %p1276_p9 = scmp.ne.s32.totalorder %s1689_s29, %s1275_s0  ;;  %p1280_p1 = scmp.lt.u32.totalorder %s1689_s29, %s1803_s13 }
 0x39b   : > { %p1281_p6 = scmp.lt.u32.totalorder %s1279_s17, %s1275_s0  ;;  %p1283_p3 = scmp.lt.u32.totalorder %s1275_s0, %s1689_s29 }
 0x39c   : > { %p1277_p12 = pnand %p1276_p9, %p1804_p13 }
 0x39d   : > { %p1282_p10 = por %p1281_p6, %p1280_p1 }
 0x39e   : > { %p1278_p4 = pneg %p1277_p12 }
 0x39f   : > { %p1284_p0 = por %p1283_p3, %p1282_p10 }
 0x3a1   : > { %p1285_p8 = pnand %p1284_p0, %p1278_p4 }
 0x3a3   : > { %1288 = shalt.err (!%p1285_p8)
}
 0x3a4   : > { %s1356_s30 = smov 128   ;;  %s1357_s14 = smov 8  }
 0x3a5   : > { %1032 = dma.vmem_to_hbm [thread:$0]  (%p1804_p13), %s1691_s15, 256, %s1689_s29, %s730_s22, %s1356_s30, %s1356_s30, %s1357_s14  }
 0x3a6   : > { %s918_s1 = sshll.u32 %s1419_s28, 1  ;;  %s1805_s12 = sld [smem:[#allocation26_spill]] }
 0x3a7   : > { %p390_p7 = scmp.lt.s32.totalorder %s918_s1, 3 }
 0x3a9   : > { %s1816_s1 = smov (!%p390_p7, %s918_s1), 3 }
 0x3aa   : > { %s919_s19 = sshll.u32 %s1816_s1, 3 }
 0x3ac   : > { %s393_s24 = scalar_lea.vmem %s1805_s12, %s919_s19 }
 0x401   : > { %v722_v4 = vpop.permute.xlu0 %721 }
 0x402   : > { %727 = vst.msk [vmem:[%s393_s24] sm:$0xff] %vm704_vm1, %v722_v4 }
 0x405   : > { %v724_v5 = vpop.permute.xlu0 %723 }
 0x406   : > { %728 = vst.msk [vmem:[%s393_s24 + $0x8] sm:$0xff] %vm704_vm1, %v724_v5 }
 0x407 PF: > { %s1806_s18 = sld [smem:[#allocation18_spill]]  ;;  %s1807_s8 = sld [smem:[#allocation20_spill]] }
 0x408   : > { %p1809_p2 = scmp.ge.s32.totalorder %s1343_s27, 2 }
 0x40d   : > { %s767_s20 = sand.u32 1, %s1806_s18   ;;  %p1808_p13 = scmp.ne.s32.totalorder %s1807_s8, 0 }
 0x40e   : > { %s768_s28 = scalar_lea.sflag [#allocation4], %s767_s20 }
 0x40f   : > { %p1052_p11 = pnand %p1809_p2, %p1808_p13 }
 0x411   : > { %1326 = dma.done.wait (!%p1052_p11), %s768_s28, 256  }
 0x412   : > { %1328 = vsyncadd (!%p1052_p11), %s768_s28, 4294967040  ;;  %s1810_s27 = sld [smem:[#allocation21_spill]]  ;;  %s1811_s7 = sld [smem:[#allocation19_spill]] }
 0x413   : > { %s1812_s26 = sld [smem:[#allocation22_spill]]  ;;  %s1813_s24 = smov %s1335_s25 }
 0x418   : > { %p23_p5 = scmp.ge.s32.totalorder %s1810_s27, 4   ;;  %s1814_s25 = smov %s1811_s7 }
 0x41a   :  { %25 = sbr.rel (!%p23_p5) target bundleno = 12 (0xc), region = 124 }
 0x421   :  { %781 = vsyncpa [#allocation3], 1 }
 0x422   :  { %783 = vsyncpa [#allocation3 + $0x1], 1 }
 0x423   :  { %784 = vsyncpa [#allocation6], 1 }
 0x424   :  { %785 = vsyncpa [#allocation10], 1 }
 0x425   :  { %786 = vsyncpa [#allocation4], 1 }
 0x426   :  { %788 = vsyncpa [#allocation4 + $0x1], 1 }

</bundles_post_ra>
